<compile_context>
chip_gen: v7x
topology: tpu7x:2x2x1
jax: 0.10.0
libtpu: 0.0.40
codegen_flags: <defaults>
</compile_context>

<pallas_src>
import jax
import jax.numpy as jnp
from jax.experimental import pallas as pl
from jax.experimental.pallas import tpu as pltpu


_LANES = 128
_TARGET_TILE_BYTES = 2 * 1024 * 1024      # ~2 MiB x-tile per grid step
_SINGLE_BLOCK_MAX_BYTES = 512 * 1024      # below this, skip the grid entirely
_VMEM_LIMIT_BYTES = 32 * 1024 * 1024      # safe on v5e/v6e (128 MiB) and v7x (64 MiB)


def make_position_encoding_table(max_seq_len: int, pe_dim: int) -> jnp.ndarray:
    """Reproduces the torch __init__ table: pe[k,:d]=sin(g), pe[k,d:]=cos(g)."""
    assert pe_dim % 2 == 0
    d = pe_dim // 2
    k = jnp.arange(max_seq_len, dtype=jnp.float32)[:, None]               # [L, 1]
    denom = 10000.0 ** (2.0 * jnp.arange(d, dtype=jnp.float32) / pe_dim)  # [d]
    g = k / denom                                                         # [L, d]
    return jnp.concatenate([jnp.sin(g), jnp.cos(g)], axis=-1)             # [L, pe_dim]


def _sublane_multiple(dtype) -> int:
    return {4: 8, 2: 16, 1: 32}.get(jnp.dtype(dtype).itemsize, 8)


def _choose_row_tile(n_rows: int, itemsize: int, sublane: int) -> int:
    """Largest row-tile <= ~_TARGET_TILE_BYTES that is a legal block height."""
    target = max(sublane,
                 (_TARGET_TILE_BYTES // (_LANES * itemsize)) // sublane * sublane)
    if n_rows <= target:
        return n_rows                     # full extent: always a legal block
    t = target
    while t >= sublane:
        if n_rows % t == 0:               # exact divisor -> no partial blocks
            return t
        t -= sublane
    return target                         # partial last block (masked writes)


# ---------------------------------------------------------------------------
# Kernels
# ---------------------------------------------------------------------------

def _add_pe_single_block_kernel(x_ref, pe_ref, o_ref):
    # x_ref/o_ref: (B, R, 128); pe_ref: (R, 128) broadcast over batch.
    o_ref[...] = (x_ref[...] + pe_ref[...][None, :, :]).astype(o_ref.dtype)


def _add_pe_rows_kernel(x_ref, pe_ref, o_ref):
    # Lane-dense tiled path: x_ref/o_ref: (TT, 128) (batch squeezed); pe_ref: (TT, 128).
    o_ref[...] = (x_ref[...] + pe_ref[...]).astype(o_ref.dtype)


def _add_pe_tc_kernel(x_ref, pe_ref, o_ref):
    # Fallback layout: x_ref/o_ref: (T, C) (batch squeezed); pe_ref: (T, C).
    o_ref[...] = (x_ref[...] + pe_ref[...]).astype(o_ref.dtype)


# ---------------------------------------------------------------------------
# Wrapper
# ---------------------------------------------------------------------------

def position_encoding_forward(x: jnp.ndarray, pe: jnp.ndarray) -> jnp.ndarray:
    """Equivalent of PositionEncoding.forward: x + pe[:T, :]."""
    squeeze_batch = False
    if x.ndim == 2:
        x = x[None, ...]
        squeeze_batch = True
    assert x.ndim == 3, "expect [T, C] or [B, T, C]"
    B, T, C = x.shape
    max_seq_len, pe_dim = pe.shape
    assert T <= max_seq_len
    assert C == pe_dim

    # Wrapper glue: static slice + cast pe to x.dtype (halves pe DMA bytes for
    # bf16 x and keeps the kernel a single-dtype add).
    pe_t = pe[:T, :].astype(x.dtype)

    if (T * C) % _LANES == 0:
        # Lane-dense layout: fold [T, C] -> [R, 128]. Elementwise correspondence
        # with pe is preserved because pe only broadcasts over B.
        R = (T * C) // _LANES
        x_rows = x.reshape(B, R, _LANES)
        pe_rows = pe_t.reshape(R, _LANES)

        if x_rows.nbytes <= _SINGLE_BLOCK_MAX_BYTES:
            # Tiny input: one block, no grid -> no per-step pipeline overhead.
            out_rows = pl.pallas_call(
                _add_pe_single_block_kernel,
                out_shape=jax.ShapeDtypeStruct((B, R, _LANES), x.dtype),
                compiler_params=pltpu.CompilerParams(
                    vmem_limit_bytes=_VMEM_LIMIT_BYTES),
            )(x_rows, pe_rows)
        else:
            itemsize = jnp.dtype(x.dtype).itemsize
            sublane = _sublane_multiple(x.dtype)
            tt = _choose_row_tile(R, itemsize, sublane)
            row_tiles = pl.cdiv(R, tt)
            out_rows = pl.pallas_call(
                _add_pe_rows_kernel,
                out_shape=jax.ShapeDtypeStruct((B, R, _LANES), x.dtype),
                # B innermost: pe's block index is constant along it, so the pe
                # tile stays VMEM-resident across the batch instead of being
                # re-fetched every step.
                grid=(row_tiles, B),
                in_specs=[
                    pl.BlockSpec((pl.Squeezed(), tt, _LANES),
                                 lambda rt, b: (b, rt, 0)),
                    pl.BlockSpec((tt, _LANES), lambda rt, b: (rt, 0)),
                ],
                out_specs=pl.BlockSpec((pl.Squeezed(), tt, _LANES),
                                       lambda rt, b: (b, rt, 0)),
                compiler_params=pltpu.CompilerParams(
                    dimension_semantics=("parallel", "parallel"),
                    vmem_limit_bytes=_VMEM_LIMIT_BYTES),
            )(x_rows, pe_rows)
        out = out_rows.reshape(B, T, C)
    else:
        # Fallback: T*C not foldable to 128 lanes. Full-(T, C) blocks are always
        # legal (block equals the full array extent).
        out = pl.pallas_call(
            _add_pe_tc_kernel,
            out_shape=jax.ShapeDtypeStruct((B, T, C), x.dtype),
            grid=(B,),
            in_specs=[
                pl.BlockSpec((pl.Squeezed(), T, C), lambda b: (b, 0, 0)),
                pl.BlockSpec((T, C), lambda b: (0, 0)),
            ],
            out_specs=pl.BlockSpec((pl.Squeezed(), T, C), lambda b: (b, 0, 0)),
            compiler_params=pltpu.CompilerParams(
                dimension_semantics=("parallel",),
                vmem_limit_bytes=_VMEM_LIMIT_BYTES),
        )(x, pe_t)

    if squeeze_batch:
        out = out[0]
    return out


if __name__ == "__main__":
    key = jax.random.PRNGKey(0)

    # Primary shapes consistent with the module: batch=2, seq=8, hidden=32.
    max_seq_len, pe_dim, B, T = 16, 32, 2, 8
    pe = make_position_encoding_table(max_seq_len, pe_dim)
    x = jax.random.normal(key, (B, T, pe_dim), dtype=jnp.float32)

    out = jax.block_until_ready(position_encoding_forward(x, pe))
    ref = x + pe[:T, :][None, :, :]
    assert out.shape == x.shape and out.dtype == x.dtype
    assert jnp.allclose(out, ref, atol=1e-6, rtol=1e-6)

    # 2-D path [T, C].
    x2d = x[0]
    out2d = jax.block_until_ready(position_encoding_forward(x2d, pe))
    assert jnp.allclose(out2d, x2d + pe[:T, :], atol=1e-6, rtol=1e-6)

    # Exercise the tiled lane-dense path (above the single-block cutoff) with a
    # bf16 input; pe is cast to x.dtype inside the wrapper.
    max2, C2, B2, T2 = 512, 512, 2, 384
    pe2 = make_position_encoding_table(max2, C2)
    x2 = jax.random.normal(jax.random.PRNGKey(1), (B2, T2, C2), dtype=jnp.bfloat16)
    out2 = jax.block_until_ready(position_encoding_forward(x2, pe2))
    ref2 = x2 + pe2[:T2, :].astype(jnp.bfloat16)[None, :, :]
    assert out2.shape == x2.shape and out2.dtype == jnp.bfloat16
    assert jnp.allclose(out2.astype(jnp.float32), ref2.astype(jnp.float32),
                        atol=1e-2, rtol=1e-2)

    # Exercise the non-lane-aligned fallback path (T*C % 128 != 0).
    max3, C3, B3, T3 = 16, 24, 2, 8     # 8 * 24 = 192, not a multiple of 128
    pe3 = make_position_encoding_table(max3, C3)
    x3 = jax.random.normal(jax.random.PRNGKey(2), (B3, T3, C3), dtype=jnp.float32)
    out3 = jax.block_until_ready(position_encoding_forward(x3, pe3))
    assert jnp.allclose(out3, x3 + pe3[:T3, :][None, :, :], atol=1e-6, rtol=1e-6)

    print("KERNEL_OK")
</pallas_src>

<mosaic_0001>
module attributes {stable_mosaic.version = 11 : i64} {
  func.func @_add_pe_single_block_kernel(%arg0: memref<2x2x128xf32, #tpu.memory_space<vmem>>, %arg1: memref<2x128xf32, #tpu.memory_space<vmem>>, %arg2: memref<2x2x128xf32, #tpu.memory_space<vmem>>) attributes {dimension_semantics = [], scalar_prefetch = 0 : i64, scratch_operands = 0 : i64, tpu.core_type = #tpu.core_type<tc>} {
    %c0 = arith.constant 0 : index
    %c0_0 = arith.constant 0 : index
    %c0_1 = arith.constant 0 : index
    %0 = vector.load %arg0[%c0, %c0_0, %c0_1] : memref<2x2x128xf32, #tpu.memory_space<vmem>>, vector<2x2x128xf32>
    %c0_2 = arith.constant 0 : index
    %c0_3 = arith.constant 0 : index
    %1 = vector.load %arg1[%c0_2, %c0_3] : memref<2x128xf32, #tpu.memory_space<vmem>>, vector<2x128xf32>
    %2 = vector.shape_cast %1 : vector<2x128xf32> to vector<1x2x128xf32>
    %3 = vector.broadcast %2 : vector<1x2x128xf32> to vector<2x2x128xf32>
    %4 = arith.addf %0, %3 : vector<2x2x128xf32>
    %c0_4 = arith.constant 0 : index
    %c0_5 = arith.constant 0 : index
    %c0_6 = arith.constant 0 : index
    %5 = vector.load %arg2[%c0_4, %c0_5, %c0_6] : memref<2x2x128xf32, #tpu.memory_space<vmem>>, vector<2x2x128xf32>
    tpu.vector_store %arg2[%c0_4, %c0_5, %c0_6], %4 {strides = array<i32>} : memref<2x2x128xf32, #tpu.memory_space<vmem>>, vector<2x2x128xf32>,
    return
  }
}

</mosaic_0001>

<bundles_post_ra>
// kernel: tpu_custom_call.1
= control target key start
LH: loop header
LB: loop body
LE: loop exit
PB: predicated region body
PF: predicated region fallthrough
CT: control target
= control target key end

     0   :  { %7 = vsyncpa [#allocation3], 0  ;;  %s154_s0 = inlined_call_operand.hbm [shape: f32[2,2,128], index: 0, kind: input, shape index: {}]   ;;  %s155_s1 = inlined_call_operand.vmem [shape: f32[2,128], index: 1, kind: input, shape index: {}]   ;;  %s156_s2 = inlined_call_operand.hbm [shape: f32[2,2,128], index: 2, kind: output, shape index: {}]  }
   0x1   :  { %8 = vsyncpa [#allocation4], 0  ;;  %s102_s9 = smov [#allocation2]   ;;  %s54_s13 = scalar_lea.hbm %s154_s0, 64 }
   0x2   :  { %s14_s10 = sshll.u32 %s102_s9, 4  ;;  %p55_p0 = scmp.ne.s32.totalorder %s154_s0, %s54_s13  ;;  %s15_s10 = int_to_ptr.vmem [resolvable:$true] %s14_s10 }
   0x3   :  { %p58_p1 = scmp.lt.u32.totalorder %s54_s13, %s154_s0 }
   0x5   :  { %p60_p2 = pnand %p58_p1, %p55_p0 }
   0x7   :  { %63 = shalt.err (!%p60_p2)
}
   0x8   :  { %s64_s18 = scalar_lea.vmem %s15_s10, 64  ;;  %p69_p4 = scmp.lt.s32.totalorder %s15_s10, %s15_s10 }
   0x9   :  { %p65_p3 = scmp.ne.s32.totalorder %s15_s10, %s64_s18  ;;  %p70_p5 = scmp.lt.s32.totalorder %s64_s18, %s64_s18 }
   0xb   :  { %p71_p6 = por %p70_p5, %p69_p4 }
   0xd   :  { %p72_p7 = pnand %p71_p6, %p65_p3 }
   0xf   :  { %75 = shalt.err (!%p72_p7)
}
  0x10   :  { %s103_s19 = smov 32   ;;  %s104_s20 = smov 2  }
  0x11   :  { %20 = dma.hbm_to_vmem [thread:$0]  %s154_s0, 64, %s15_s10, [#allocation3], %s103_s19, %s103_s19, %s104_s20  }
  0x12   :  { %98 = dma.done.wait [#allocation3], 64  }
  0x13   :  { %99 = vsyncadd [#allocation3], 4294967232  ;;  %s105_s23 = smov [#allocation5]   ;;  %v26_v0 = vld [vmem:[#allocation2] sm:$0x3] }
  0x14   :  { %s38_s24 = sshll.u32 %s105_s23, 4  ;;  %v28_v1 = vld [vmem:[%s155_s1] sm:$0x3]  ;;  %v27_v2 = vld [vmem:[#allocation2 + $0x2] sm:$0x3]  ;;  %s39_s24 = int_to_ptr.vmem [resolvable:$true] %s38_s24 }
  0x15   :  { %v29_v3 = vadd.f32 %v28_v1, %v26_v0  ;;  %v30_v4 = vadd.f32 %v28_v1, %v27_v2  ;;  %s76_s27 = scalar_lea.vmem %s39_s24, 64  ;;  %p81_p9 = scmp.lt.s32.totalorder %s39_s24, %s39_s24 }
  0x16   :  { %p77_p8 = scmp.ne.s32.totalorder %s39_s24, %s76_s27  ;;  %p82_p10 = scmp.lt.s32.totalorder %s76_s27, %s76_s27 }
  0x17   :  { %31 = vst [vmem:[#allocation5] sm:$0x3] %v29_v3  ;;  %32 = vst [vmem:[#allocation5 + $0x2] sm:$0x3] %v30_v4 }
  0x18   :  { %p83_p11 = por %p82_p10, %p81_p9 }
  0x1a   :  { %p84_p12 = pnand %p83_p11, %p77_p8 }
  0x1c   :  { %87 = shalt.err (!%p84_p12)
}
  0x1d   :  { %s88_s29 = scalar_lea.hbm %s156_s2, 64 }
  0x1e   :  { %p89_p13 = scmp.ne.s32.totalorder %s156_s2, %s88_s29  ;;  %p92_p0 = scmp.lt.u32.totalorder %s88_s29, %s156_s2 }
  0x20   :  { %p94_p1 = pnand %p92_p0, %p89_p13 }
  0x22   :  { %97 = shalt.err (!%p94_p1)
}
  0x23   :  { %44 = dma.vmem_to_hbm [thread:$0]  %s39_s24, 64, %s156_s2, [#allocation4], %s103_s19, %s103_s19, %s104_s20  }
  0x24   :  { %100 = dma.done.wait [#allocation4], 64  }
  0x25   :  { %101 = vsyncadd [#allocation4], 4294967232 }
  0x26   :  { %48 = vsyncpa [#allocation3], 1 }
  0x27   :  { %49 = vsyncpa [#allocation4], 1 }

</bundles_post_ra>
